<compile_context>
chip_gen: v7x
topology: tpu7x:2x2x1
jax: 0.10.0
libtpu: 0.0.40
codegen_flags: <defaults>
</compile_context>

<pallas_src>
import jax
import jax.numpy as jnp
from jax import lax
from jax.experimental import pallas as pl
from jax.experimental.pallas import tpu as pltpu

_EPS = 1e-12                         # PyTorch spectral_norm default eps
_RESIDENT_W_BYTES = 6 * 1024 * 1024  # keep whole bf16 weight in VMEM below this
_VMEM_TILE_BUDGET = 40 * 1024 * 1024
_VMEM_LIMIT_BYTES = 48 * 1024 * 1024


def _round_up(x, m):
    return ((x + m - 1) // m) * m


def _divisor_tile(total, target):
    """Largest multiple of 128 that divides `total` (a multiple of 128) and is <= target."""
    t = max(128, (min(total, target) // 128) * 128)
    while total % t:
        t -= 128
    return t


def _conv_vmem_bytes(tm, tn, tk):
    # 2x-buffered bf16 patch & weight blocks + 2x-buffered f32 resident output + bias.
    return 2 * tk * tm * 2 + 2 * tn * tk * 2 + 2 * tn * tm * 4 + 2 * tn * 4


# ----------------------------------------------------------------------------
# Kernel 1: one power iteration -> updated u and 1/sigma (no weight rewrite).
# Two skinny MXU matvecs + EUP rsqrt; W is streamed through the MXU, not the VPU.
# u is stored as an (8, Cout_pad) slab (row 0 meaningful, rows 1..7 zero) so all
# matmuls have a full sublane group.
# ----------------------------------------------------------------------------
def _sn_kernel(w_ref, u_ref, u_new_ref, inv_sigma_ref):
    w = w_ref[...]                                   # (Cout_pad, K_pad) f32
    u = u_ref[...]                                   # (8, Cout_pad)     f32 (row 0 = u)

    # v = normalize(W^T u)  -> (8, K_pad), rows 1..7 stay zero
    v = jnp.dot(u, w, preferred_element_type=jnp.float32)
    v = v * lax.rsqrt(jnp.maximum(jnp.sum(v * v), _EPS * _EPS))

    # wv = W v (contract K on both operands; no transpose materialized)
    wv = lax.dot_general(v, w, (((1,), (1,)), ((), ())),
                         preferred_element_type=jnp.float32)       # (8, Cout_pad)
    u_new = wv * lax.rsqrt(jnp.maximum(jnp.sum(wv * wv), _EPS * _EPS))

    sigma = jnp.sum(u_new * wv)

    u_new_ref[...] = u_new
    inv_sigma_ref[...] = jnp.full((1, 1), 1.0 / jnp.maximum(sigma, 1e-20),
                                  dtype=jnp.float32)


def spectral_norm_stats(w_pad, u):
    """w_pad: (Cout_pad, K_pad) f32, u: (8, Cout_pad) f32 -> (u_new, inv_sigma(1,1))."""
    return pl.pallas_call(
        _sn_kernel,
        out_shape=(jax.ShapeDtypeStruct(u.shape, jnp.float32),
                   jax.ShapeDtypeStruct((1, 1), jnp.float32)),
        in_specs=[pl.BlockSpec(memory_space=pltpu.MemorySpace.VMEM),
                  pl.BlockSpec(memory_space=pltpu.MemorySpace.VMEM)],
        out_specs=(pl.BlockSpec(memory_space=pltpu.MemorySpace.VMEM),
                   pl.BlockSpec(memory_space=pltpu.MemorySpace.VMEM)),
        compiler_params=pltpu.CompilerParams(
            vmem_limit_bytes=_VMEM_LIMIT_BYTES),
    )(w_pad, u)


# ----------------------------------------------------------------------------
# Kernel 2: tiled matmul  W (Cout, K) @ patches (K, spatial)  per batch element,
# accumulating directly into the resident f32 output block; fused 1/sigma scale
# + bias epilogue on the last K step.  grid = (N, Cout/tn, spatial/tm, K/tk).
# ----------------------------------------------------------------------------
def _conv_mm_kernel(inv_sigma_ref, p_ref, w_ref, b_ref, o_ref):
    k = pl.program_id(3)
    part = jnp.dot(w_ref[...], p_ref[...], preferred_element_type=jnp.float32)

    @pl.when(k == 0)
    def _():
        o_ref[...] = part

    @pl.when(k > 0)
    def _():
        o_ref[...] += part

    @pl.when(k == pl.num_programs(3) - 1)
    def _():
        o_ref[...] = (o_ref[...] * inv_sigma_ref[0] + b_ref[...]).astype(o_ref.dtype)


def conv_matmul_scaled(patches, w_ck, bias_col, inv_sigma, *, tm, tn, tk):
    """patches: (N, K_pad, HoWo_pad) bf16, w_ck: (Cout_pad, K_pad) bf16 (unnormalized),
    bias_col: (Cout_pad, 1) f32, inv_sigma: (1,) f32 -> (N, Cout_pad, HoWo_pad) f32."""
    n, k_pad, howo_pad = patches.shape
    cout_pad = w_ck.shape[0]
    grid = (n, cout_pad // tn, howo_pad // tm, k_pad // tk)
    return pl.pallas_call(
        _conv_mm_kernel,
        out_shape=jax.ShapeDtypeStruct((n, cout_pad, howo_pad), jnp.float32),
        grid_spec=pltpu.PrefetchScalarGridSpec(
            num_scalar_prefetch=1,                              # inv_sigma -> SMEM
            grid=grid,
            in_specs=[
                pl.BlockSpec((None, tk, tm), lambda b, j, i, k, s: (b, k, i)),  # patches
                pl.BlockSpec((tn, tk),       lambda b, j, i, k, s: (j, k)),     # weight
                pl.BlockSpec((tn, 1),        lambda b, j, i, k, s: (j, 0)),     # bias
            ],
            out_specs=pl.BlockSpec((None, tn, tm), lambda b, j, i, k, s: (b, j, i)),
        ),
        compiler_params=pltpu.CompilerParams(
            dimension_semantics=("parallel", "parallel", "parallel", "arbitrary"),
            vmem_limit_bytes=_VMEM_LIMIT_BYTES,
        ),
    )(inv_sigma, patches, w_ck, bias_col)


# ----------------------------------------------------------------------------
# Module
# ----------------------------------------------------------------------------
class SpectralNormConv2d:
    """JAX/Pallas equivalent of spectral_norm(nn.Conv2d(...)) forward
    (training mode: one power iteration per call + in-place u update,
    matching PyTorch's defaults n_power_iterations=1, eps=1e-12)."""

    def __init__(self, in_channels, out_channels, kernel_size,
                 stride=1, padding=0, bias=True, *, key):
        self.in_channels = in_channels
        self.out_channels = out_channels
        self.kh = self.kw = kernel_size
        self.stride = stride
        self.padding = padding
        self.use_bias = bias

        self.k_dim = in_channels * self.kh * self.kw
        self.k_pad = _round_up(self.k_dim, 128)
        self.cout_pad = _round_up(out_channels, 128)

        kw_, kb_, ku_ = jax.random.split(key, 3)
        bound = 1.0 / jnp.sqrt(self.k_dim)
        # Deterministic "kaiming-uniform-like" init (synthetic weights).
        self.weight = jax.random.uniform(
            kw_, (out_channels, in_channels, self.kh, self.kw),
            minval=-bound, maxval=bound, dtype=jnp.float32)
        self.bias = (jax.random.uniform(kb_, (out_channels,),
                                        minval=-bound, maxval=bound,
                                        dtype=jnp.float32)
                     if bias else jnp.zeros((out_channels,), jnp.float32))
        # spectral_norm u buffer: normalize(randn(Cout)); stored as row 0 of an
        # (8, Cout_pad) slab (rows 1..7 stay zero through the iteration).
        u = jax.random.normal(ku_, (out_channels,), dtype=jnp.float32)
        u = u / jnp.maximum(jnp.linalg.norm(u), _EPS)
        self.u = jnp.zeros((8, self.cout_pad), jnp.float32).at[0, :out_channels].set(u)

    # ------------------------------------------------------------------
    def _out_spatial(self, H, W):
        p, s = self.padding, self.stride
        Ho = (H + 2 * p - self.kh) // s + 1
        Wo = (W + 2 * p - self.kw) // s + 1
        return Ho, Wo

    def _im2col(self, x, Ho, Wo, howo_pad):
        """x: (N, Cin, H, W) -> bf16 patches (N, K_pad, HoWo_pad).
        Only contiguous reshapes (no K-past-spatial transpose)."""
        N = x.shape[0]
        p, s = self.padding, self.stride
        xp = jnp.pad(x.astype(jnp.bfloat16), ((0, 0), (0, 0), (p, p), (p, p)))
        cols = []
        for ki in range(self.kh):
            for kj in range(self.kw):
                cols.append(xp[:, :, ki:ki + (Ho - 1) * s + 1:s,
                                     kj:kj + (Wo - 1) * s + 1:s])   # (N,Cin,Ho,Wo)
        pat = jnp.stack(cols, axis=2)                  # (N, Cin, kh*kw, Ho, Wo)
        # K ordered Cin-major, then kh, kw (matches weight.reshape(Cout, -1)).
        pat = pat.reshape(N, self.k_dim, Ho * Wo)
        pat = jnp.pad(pat, ((0, 0), (0, self.k_pad - self.k_dim),
                            (0, howo_pad - Ho * Wo)))
        return pat

    # ------------------------------------------------------------------
    def __call__(self, x):
        if x.ndim != 4:
            raise ValueError('expected 4D input (got {}D input)'.format(x.ndim))
        N, _, H, W = x.shape
        Cout, K = self.out_channels, self.k_dim
        Ho, Wo = self._out_spatial(H, W)
        HoWo = Ho * Wo

        # ---- tile selection (lane-aligned divisors, VMEM budget <= 40 MiB) ----
        howo_pad = _round_up(HoWo, 128)
        tm = _divisor_tile(howo_pad, 1024)
        tn = _divisor_tile(self.cout_pad, 512)
        tk = _divisor_tile(self.k_pad, 512)
        if self.cout_pad * self.k_pad * 2 <= _RESIDENT_W_BYTES:
            tn, tk = self.cout_pad, self.k_pad        # whole bf16 weight resident in VMEM
        while tm > 128 and _conv_vmem_bytes(tm, tn, tk) > _VMEM_TILE_BUDGET:
            tm = _divisor_tile(howo_pad, tm - 128)
        if _conv_vmem_bytes(tm, tn, tk) > _VMEM_TILE_BUDGET:
            tn = _divisor_tile(self.cout_pad, 512)
            tk = _divisor_tile(self.k_pad, 512)
        # v7x has 2 TensorCores: make sure the parallel grid axes have >= 2 blocks.
        if N * (self.cout_pad // tn) * (howo_pad // tm) < 2 and tm >= 256:
            tm = _divisor_tile(howo_pad, tm // 2)

        # ---- spectral-norm stats (Pallas kernel #1): u_new and 1/sigma ----
        w_mat = self.weight.reshape(Cout, K)
        w_pad = jnp.pad(w_mat, ((0, self.cout_pad - Cout), (0, self.k_pad - K)))
        u_new, inv_sigma = spectral_norm_stats(w_pad, self.u)
        self.u = u_new            # PyTorch-style in-place u update (eager Python state)

        # ---- conv as tiled matmul (Pallas kernel #2), fused 1/sigma + bias ----
        patches = self._im2col(x, Ho, Wo, howo_pad)            # (N, K_pad, HoWo_pad) bf16
        w_bf16 = w_pad.astype(jnp.bfloat16)                    # (Cout_pad, K_pad)   bf16
        bias_col = jnp.pad(self.bias, (0, self.cout_pad - Cout))[:, None].astype(jnp.float32)

        out3 = conv_matmul_scaled(patches, w_bf16, bias_col,
                                  inv_sigma.reshape((1,)),
                                  tm=tm, tn=tn, tk=tk)         # (N, Cout_pad, HoWo_pad)
        # NCHW output falls out directly -- no transpose.
        return out3[:, :Cout, :HoWo].reshape(N, Cout, Ho, Wo)


# ----------------------------------------------------------------------------
# Pure-JAX references for sanity checking.
# ----------------------------------------------------------------------------
def _reference(module, x, u_row, *, mirror_bf16):
    """u_row: (1, Cout) f32 snapshot of u *before* the forward."""
    Cout, K = module.out_channels, module.k_dim
    w_mat = module.weight.reshape(Cout, K).astype(jnp.float32)

    v = jnp.dot(u_row, w_mat, precision=lax.Precision.HIGHEST)
    v = v / jnp.maximum(jnp.linalg.norm(v), _EPS)
    wv = jnp.dot(v, w_mat.T, precision=lax.Precision.HIGHEST)
    u_new = wv / jnp.maximum(jnp.linalg.norm(wv), _EPS)
    sigma = jnp.sum(u_new * wv)

    if mirror_bf16:   # mirror the kernel's bf16 MXU inputs (f32 accumulation)
        w_use = module.weight.astype(jnp.bfloat16).astype(jnp.float32)
        x_use = x.astype(jnp.bfloat16).astype(jnp.float32)
    else:
        w_use, x_use = module.weight, x

    p = module.padding
    y = lax.conv_general_dilated(
        x_use, w_use, window_strides=(module.stride, module.stride),
        padding=((p, p), (p, p)),
        dimension_numbers=('NCHW', 'OIHW', 'NCHW'),
        precision=lax.Precision.HIGHEST)
    y = y * (1.0 / sigma) + module.bias[None, :, None, None]
    return y, u_new


if __name__ == "__main__":
    key = jax.random.PRNGKey(0)
    k_mod, k_x = jax.random.split(key)

    module = SpectralNormConv2d(in_channels=4, out_channels=8, kernel_size=3,
                                stride=1, padding=1, bias=True, key=k_mod)
    x = jax.random.normal(k_x, (2, 4, 16, 16), dtype=jnp.float32)

    Cout = module.out_channels
    u0 = module.u[0, :Cout][None, :]          # snapshot before forward

    y = jax.block_until_ready(module(x))
    u1 = module.u[0, :Cout][None, :]          # u after the in-place update

    y_ref_bf16, u_ref = _reference(module, x, u0, mirror_bf16=True)
    y_ref_f32, _ = _reference(module, x, u0, mirror_bf16=False)

    assert y.shape == (2, 8, 16, 16), y.shape
    assert jnp.allclose(u1, u_ref, atol=5e-3, rtol=5e-3), \
        float(jnp.max(jnp.abs(u1 - u_ref)))
    # check vs a reference that mirrors the kernel's bf16 MXU inputs
    assert jnp.allclose(y, y_ref_bf16, atol=1e-2, rtol=1e-2), \
        float(jnp.max(jnp.abs(y - y_ref_bf16)))
    # loose check vs a full-f32 reference (bf16 input-rounding tolerance)
    assert jnp.allclose(y, y_ref_f32, atol=5e-2, rtol=5e-2), \
        float(jnp.max(jnp.abs(y - y_ref_f32)))

    # second forward exercises the PyTorch-style u-buffer update path
    y2 = jax.block_until_ready(module(x))
    assert y2.shape == y.shape

    print("KERNEL_OK")
</pallas_src>

<mosaic_0001>
module attributes {stable_mosaic.version = 11 : i64} {
  func.func @_sn_kernel(%arg0: memref<128x128xf32, #tpu.memory_space<vmem>>, %arg1: memref<8x128xf32, #tpu.memory_space<vmem>>, %arg2: memref<8x128xf32, #tpu.memory_space<vmem>>, %arg3: memref<1x1xf32, #tpu.memory_space<vmem>>) attributes {dimension_semantics = [], scalar_prefetch = 0 : i64, scratch_operands = 0 : i64, tpu.core_type = #tpu.core_type<tc>} {
    %c0 = arith.constant 0 : index
    %c0_0 = arith.constant 0 : index
    %0 = vector.load %arg0[%c0, %c0_0] : memref<128x128xf32, #tpu.memory_space<vmem>>, vector<128x128xf32>
    %c0_1 = arith.constant 0 : index
    %c0_2 = arith.constant 0 : index
    %1 = vector.load %arg1[%c0_1, %c0_2] : memref<8x128xf32, #tpu.memory_space<vmem>>, vector<8x128xf32>
    %cst = arith.constant dense<0.000000e+00> : vector<8x128xf32>
    %2 = tpu.matmul %1, %0, %cst {dimension_numbers = #tpu.dot_dimension_numbers<[1], [0], [0], [1], [0, 0, 1, 1], [], []>} : vector<8x128xf32>, vector<128x128xf32>, vector<8x128xf32> -> vector<8x128xf32>
    %3 = arith.mulf %2, %2 : vector<8x128xf32>
    %4 = vector.shape_cast %3 : vector<8x128xf32> to vector<1x8x128xf32>
    %cst_3 = arith.constant dense<0.000000e+00> : vector<1xf32>
    %5 = vector.multi_reduction <add>, %4, %cst_3 [1, 2] : vector<1x8x128xf32> to vector<1xf32>
    %6 = vector.shape_cast %5 : vector<1xf32> to vector<1x1x1xf32>
    %7 = vector.extract %6[0, 0, 0] : f32 from vector<1x1x1xf32>
    %cst_4 = arith.constant 1.000000e-24 : f32
    %8 = arith.maximumf %7, %cst_4 : f32
    %9 = math.rsqrt %8 : f32
    %10 = vector.broadcast %9 : f32 to vector<8x128xf32>
    %11 = arith.mulf %2, %10 : vector<8x128xf32>
    %cst_5 = arith.constant dense<0.000000e+00> : vector<8x128xf32>
    %12 = tpu.matmul %11, %0, %cst_5 {dimension_numbers = #tpu.dot_dimension_numbers<[1], [1], [0], [0], [0, 0, 1, 0], [], []>} : vector<8x128xf32>, vector<128x128xf32>, vector<8x128xf32> -> vector<8x128xf32>
    %13 = arith.mulf %12, %12 : vector<8x128xf32>
    %14 = vector.shape_cast %13 : vector<8x128xf32> to vector<1x8x128xf32>
    %cst_6 = arith.constant dense<0.000000e+00> : vector<1xf32>
    %15 = vector.multi_reduction <add>, %14, %cst_6 [1, 2] : vector<1x8x128xf32> to vector<1xf32>
    %16 = vector.shape_cast %15 : vector<1xf32> to vector<1x1x1xf32>
    %17 = vector.extract %16[0, 0, 0] : f32 from vector<1x1x1xf32>
    %cst_7 = arith.constant 1.000000e-24 : f32
    %18 = arith.maximumf %17, %cst_7 : f32
    %19 = math.rsqrt %18 : f32
    %20 = vector.broadcast %19 : f32 to vector<8x128xf32>
    %21 = arith.mulf %12, %20 : vector<8x128xf32>
    %22 = arith.mulf %21, %12 : vector<8x128xf32>
    %23 = vector.shape_cast %22 : vector<8x128xf32> to vector<1x8x128xf32>
    %cst_8 = arith.constant dense<0.000000e+00> : vector<1xf32>
    %24 = vector.multi_reduction <add>, %23, %cst_8 [1, 2] : vector<1x8x128xf32> to vector<1xf32>
    %25 = vector.shape_cast %24 : vector<1xf32> to vector<1x1x1xf32>
    %26 = vector.extract %25[0, 0, 0] : f32 from vector<1x1x1xf32>
    %c0_9 = arith.constant 0 : index
    %c0_10 = arith.constant 0 : index
    %27 = vector.load %arg2[%c0_9, %c0_10] : memref<8x128xf32, #tpu.memory_space<vmem>>, vector<8x128xf32>
    tpu.vector_store %arg2[%c0_9, %c0_10], %21 {strides = array<i32>} : memref<8x128xf32, #tpu.memory_space<vmem>>, vector<8x128xf32>,
    %cst_11 = arith.constant 9.99999968E-21 : f32
    %28 = arith.maximumf %26, %cst_11 : f32
    %cst_12 = arith.constant 1.000000e+00 : f32
    %29 = arith.divf %cst_12, %28 : f32
    %30 = vector.broadcast %29 : f32 to vector<1x1xf32>
    %c0_13 = arith.constant 0 : index
    %c0_14 = arith.constant 0 : index
    %31 = vector.load %arg3[%c0_13, %c0_14] : memref<1x1xf32, #tpu.memory_space<vmem>>, vector<1x1xf32>
    tpu.vector_store %arg3[%c0_13, %c0_14], %30 {strides = array<i32>} : memref<1x1xf32, #tpu.memory_space<vmem>>, vector<1x1xf32>,
    return
  }
}

</mosaic_0001>

<bundles_post_ra>
// kernel: tpu_custom_call.1
= control target key start
LH: loop header
LB: loop body
LE: loop exit
PB: predicated region body
PF: predicated region fallthrough
CT: control target
= control target key end

     0   :  { %9 = vsyncpa [#allocation3], 0  ;;  %s634_s0 = inlined_call_operand.hbm [shape: f32[128,128], index: 0, kind: input, shape index: {}]   ;;  %s635_s1 = inlined_call_operand.hbm [shape: f32[8,128], index: 1, kind: input, shape index: {}]   ;;  %s636_s2 = inlined_call_operand.hbm [shape: f32[8,128], index: 2, kind: output, shape index: {0}]   ;;  %s637_s3 = inlined_call_operand.hbm [shape: f32[1,1], index: 3, kind: output, shape index: {1}]  }
   0x1   :  { %10 = vsyncpa [#allocation6], 0 }
   0x2   :  { %11 = vsyncpa [#allocation4], 0 }
   0x3   :  { %12 = vsyncpa [#allocation9], 0  ;;  %s555_s12 = smov [#allocation2]   ;;  %s459_s16 = scalar_lea.hbm %s634_s0, 2048 }
   0x4   :  { %s18_s13 = sshll.u32 %s555_s12, 4  ;;  %p460_p0 = scmp.ne.s32.totalorder %s634_s0, %s459_s16  ;;  %s19_s13 = int_to_ptr.vmem [resolvable:$true] %s18_s13 }
   0x5   :  { %p463_p1 = scmp.lt.u32.totalorder %s459_s16, %s634_s0 }
   0x7   :  { %p465_p2 = pnand %p463_p1, %p460_p0 }
   0x9   :  { %468 = shalt.err (!%p465_p2)
}
   0xa   :  { %s469_s21 = scalar_lea.vmem %s19_s13, 2048  ;;  %p474_p4 = scmp.lt.s32.totalorder %s19_s13, %s19_s13 }
   0xb   :  { %p470_p3 = scmp.ne.s32.totalorder %s19_s13, %s469_s21  ;;  %p475_p5 = scmp.lt.s32.totalorder %s469_s21, %s469_s21 }
   0xd   :  { %p476_p6 = por %p475_p5, %p474_p4 }
   0xf   :  { %p477_p7 = pnand %p476_p6, %p470_p3 }
  0x11   :  { %480 = shalt.err (!%p477_p7)
}
  0x12   :  { %s556_s22 = smov 128   ;;  %s557_s23 = smov 8  }
  0x13   :  { %24 = dma.hbm_to_vmem [thread:$0]  %s634_s0, 2048, %s19_s13, [#allocation3], %s556_s22, %s556_s22, %s557_s23  }
  0x14   :  { %s558_s26 = smov [#allocation5]   ;;  %s481_s30 = scalar_lea.hbm %s635_s1, 128 }
  0x15   :  { %s31_s27 = sshll.u32 %s558_s26, 4  ;;  %p482_p8 = scmp.ne.s32.totalorder %s635_s1, %s481_s30  ;;  %s32_s27 = int_to_ptr.vmem [resolvable:$true] %s31_s27 }
  0x16   :  { %p485_p9 = scmp.lt.u32.totalorder %s481_s30, %s635_s1 }
  0x18   :  { %p487_p10 = pnand %p485_p9, %p482_p8 }
  0x1a   :  { %490 = shalt.err (!%p487_p10)
}
  0x1b   :  { %s491_s8 = scalar_lea.vmem %s32_s27, 128  ;;  %p496_p12 = scmp.lt.s32.totalorder %s32_s27, %s32_s27 }
  0x1c   :  { %p492_p11 = scmp.ne.s32.totalorder %s32_s27, %s491_s8  ;;  %p497_p13 = scmp.lt.s32.totalorder %s491_s8, %s491_s8 }
  0x1e   :  { %p498_p0 = por %p497_p13, %p496_p12 }
  0x20   :  { %p499_p1 = pnand %p498_p0, %p492_p11 }
  0x22   :  { %502 = shalt.err (!%p499_p1)
}
  0x23   :  { %34 = dma.hbm_to_vmem [thread:$0]  %s635_s1, 128, %s32_s27, [#allocation6]  }
  0x24   :  { %547 = dma.done.wait [#allocation3], 2048  }
  0x25   :  { %548 = vsyncadd [#allocation3], 4294965248 }
  0x26   :  { %549 = dma.done.wait [#allocation6], 128  }
  0x27   :  { %550 = vsyncadd [#allocation6], 4294967168  ;;  %v559_v0 = vmov 0.0|0.0   ;;  %vm560_vm0 = vmmov 0   ;;  %v561_v1 = vmov 0.0   ;;  %v41_v2 = vld [vmem:[#allocation2] sm:$0xff] }
  0x28   :  { %382 = vmatprep.subr.bf16.mxu0 %v559_v0  ;;  %344 = vmatprep.mubr.msk.f32.mxu0 %vm560_vm0, %v561_v1  ;;  %v42_v3 = vld [vmem:[#allocation2 + $0x8] sm:$0xff]  ;;  %v43_v4 = vld [vmem:[#allocation2 + $0x10] sm:$0xff]  ;;  %v44_v6 = vld [vmem:[#allocation2 + $0x18] sm:$0xff]  ;;  %s562_s10 = smov 1e-24   ;;  %s563_s16 = smov [#allocation7]  }
  0x29   :  { %406 = vmatprep.subr.bf16.mxu1 %v559_v0  ;;  %379 = vmatprep.mubr.msk.f32.mxu1 %vm560_vm0, %v561_v1  ;;  %v383_v5 = vpack.c.bf16 %v42_v3, %v41_v2  ;;  %v386_v7 = vpack.c.bf16 %v44_v6, %v43_v4  ;;  %v45_v8 = vld [vmem:[#allocation2 + $0x20] sm:$0xff]  ;;  %v46_v9 = vld [vmem:[#allocation2 + $0x28] sm:$0xff]  ;;  %v47_v11 = vld [vmem:[#allocation2 + $0x30] sm:$0xff]  ;;  %s254_s17 = sshll.u32 %s563_s16, 4  ;;  %s255_s17 = int_to_ptr.vmem [resolvable:$true] %s254_s17 }
  0x2a   :  { %v389_v10 = vpack.c.bf16 %v46_v9, %v45_v8  ;;  %v48_v12 = vld [vmem:[#allocation2 + $0x38] sm:$0xff]  ;;  %v49_v14 = vld [vmem:[#allocation2 + $0x40] sm:$0xff]  ;;  %v50_v15 = vld [vmem:[#allocation2 + $0x48] sm:$0xff]  ;;  %s503_s18 = scalar_lea.vmem %s255_s17, 128  ;;  %p508_p3 = scmp.lt.s32.totalorder %s255_s17, %s255_s17 }
  0x2b   :  { %384 = vmatpush3.bf16.msra.mxu0 %v383_v5  ;;  %408 = vmatpush3.bf16.xpose.msra.mxu1 %v383_v5  ;;  %v392_v13 = vpack.c.bf16 %v48_v12, %v47_v11  ;;  %v395_v16 = vpack.c.bf16 %v50_v15, %v49_v14  ;;  %v51_v17 = vld [vmem:[#allocation2 + $0x50] sm:$0xff]  ;;  %v52_v18 = vld [vmem:[#allocation2 + $0x58] sm:$0xff]  ;;  %v53_v20 = vld [vmem:[#allocation2 + $0x60] sm:$0xff]  ;;  %p504_p2 = scmp.ne.s32.totalorder %s255_s17, %s503_s18  ;;  %p509_p4 = scmp.lt.s32.totalorder %s503_s18, %s503_s18 }
  0x2c   :  { %385 = vmatprep.subr.bf16.mxu0 %v559_v0  ;;  %409 = vmatprep.subr.bf16.mxu1 %v559_v0  ;;  %v398_v19 = vpack.c.bf16 %v52_v18, %v51_v17  ;;  %v54_v21 = vld [vmem:[#allocation2 + $0x68] sm:$0xff]  ;;  %v55_v23 = vld [vmem:[#allocation2 + $0x70] sm:$0xff]  ;;  %v56_v24 = vld [vmem:[#allocation2 + $0x78] sm:$0xff] }
  0x2d   :  { %v401_v22 = vpack.c.bf16 %v54_v21, %v53_v20  ;;  %v404_v25 = vpack.c.bf16 %v56_v24, %v55_v23  ;;  %v57_v26 = vld [vmem:[#allocation5] sm:$0xff]  ;;  %p510_p5 = por %p509_p4, %p508_p3 }
  0x2f   :  { %387 = vmatpush3.bf16.msra.mxu0 %v386_v7  ;;  %p511_p6 = pnand %p510_p5, %p504_p2 }
  0x30   :  { %388 = vmatprep.subr.bf16.mxu0 %v559_v0 }
  0x33   :  { %390 = vmatpush3.bf16.msra.mxu0 %v389_v10  ;;  %411 = vmatpush3.bf16.xpose.msra.mxu1 %v386_v7 }
  0x34   :  { %391 = vmatprep.subr.bf16.mxu0 %v559_v0  ;;  %412 = vmatprep.subr.bf16.mxu1 %v559_v0 }
  0x37   :  { %393 = vmatpush3.bf16.msra.mxu0 %v392_v13 }
  0x38   :  { %394 = vmatprep.subr.bf16.mxu0 %v559_v0 }
  0x3b   :  { %396 = vmatpush3.bf16.msra.mxu0 %v395_v16  ;;  %414 = vmatpush3.bf16.xpose.msra.mxu1 %v389_v10 }
  0x3c   :  { %397 = vmatprep.subr.bf16.mxu0 %v559_v0  ;;  %415 = vmatprep.subr.bf16.mxu1 %v559_v0 }
  0x3f   :  { %399 = vmatpush3.bf16.msra.mxu0 %v398_v19 }
  0x40   :  { %400 = vmatprep.subr.bf16.mxu0 %v559_v0 }
  0x43   :  { %402 = vmatpush3.bf16.msra.mxu0 %v401_v22  ;;  %417 = vmatpush3.bf16.xpose.msra.mxu1 %v392_v13 }
  0x44   :  { %403 = vmatprep.subr.bf16.mxu0 %v559_v0  ;;  %418 = vmatprep.subr.bf16.mxu1 %v559_v0 }
  0x47   :  { %405 = vmatpush3.bf16.msra.mxu0 %v404_v25 }
  0x4a   :  { %345 = vmatmul.mubr.f32.vlgmr.msra.gmra.mrb[0].mxu0 %v57_v26 }
  0x4b   :  { %420 = vmatpush3.bf16.xpose.msra.mxu1 %v395_v16 }
  0x4c   :  { %421 = vmatprep.subr.bf16.mxu1 %v559_v0 }
  0x53   :  { %423 = vmatpush3.bf16.xpose.msra.mxu1 %v398_v19 }
  0x54   :  { %424 = vmatprep.subr.bf16.mxu1 %v559_v0 }
  0x5b   :  { %426 = vmatpush3.bf16.xpose.msra.mxu1 %v401_v22 }
  0x5c   :  { %427 = vmatprep.subr.bf16.mxu1 %v559_v0 }
  0x63   :  { %429 = vmatpush3.bf16.xpose.msra.mxu1 %v404_v25 }
 0x11d   :  { %v124_v27 = vpop.f32.mrb[0].mxu0 }
 0x11e   :  { %v346_v28 = vpop.f32.mrb[1].mxu0  ;;  %v128_v29 = vmul.f32 %v124_v27, %v124_v27 }
 0x120   :  { %129 = vadd.xlane.f32.xlu0 %v128_v29 }
 0x1ad   :  { %v130_v30 = vpop.xlane.xlu0 %129 }
 0x1ae   :  { %v131_v31 = vrot.slane %v130_v30, 4 }
 0x1b0   :  { %v132_v32 = vadd.f32 %v131_v31, %v130_v30 }
 0x1b2   :  { %v133_v33 = vrot.slane %v132_v32, 2 }
 0x1b4   :  { %v134_v34 = vadd.f32 %v133_v33, %v132_v32 }
 0x1b6   :  { %v135_v35 = vrot.slane %v134_v34, 1 }
 0x1b8   :  { %v136_v36 = vadd.f32 %v135_v35, %v134_v34 }
 0x1ba   :  { %430 = vpush %v136_v36 }
 0x1eb   :  { %s431_s1 = spop %430 }
 0x1ec   :  { %s138_s11 = smax.f32 %s562_s10, %s431_s1 }
 0x1ed   :  { %v139_v37 = vstv %s138_s11 }
 0x1ee   :  { %453 = vrsqrt.f32 %v139_v37 }
 0x1f8   :  { %v454_v38 = vpop.eup %453 }
 0x1f9   :  { %432 = vpush %v454_v38 }
 0x22a   :  { %s433_s12 = spop %432 }
 0x22b   :  { %v142_v39 = vstv %s433_s12 }
 0x22c   :  { %v143_v40 = vmul.f32 %v142_v39, %v124_v27 }
 0x22e   :  { %380 = vmatmul.mubr.f32.vlgmr.msra.gmra.mrb[0].mxu1 %v143_v40 }
 0x301   :  { %v210_v41 = vpop.f32.mrb[0].mxu1 }
 0x302   :  { %v381_v42 = vpop.f32.mrb[1].mxu1  ;;  %v214_v43 = vmul.f32 %v210_v41, %v210_v41 }
 0x304   :  { %215 = vadd.xlane.f32.xlu0 %v214_v43 }
 0x391   :  { %v216_v44 = vpop.xlane.xlu0 %215 }
 0x392   :  { %v217_v45 = vrot.slane %v216_v44, 4 }
 0x394   :  { %v218_v46 = vadd.f32 %v217_v45, %v216_v44 }
 0x396   :  { %v219_v47 = vrot.slane %v218_v46, 2 }
 0x398   :  { %v220_v48 = vadd.f32 %v219_v47, %v218_v46 }
 0x39a   :  { %v221_v49 = vrot.slane %v220_v48, 1 }
 0x39c   :  { %v222_v50 = vadd.f32 %v221_v49, %v220_v48 }
 0x39e   :  { %434 = vpush %v222_v50 }
 0x3cf   :  { %s435_s13 = spop %434 }
 0x3d0   :  { %s224_s14 = smax.f32 %s562_s10, %s435_s13 }
 0x3d1   :  { %v225_v51 = vstv %s224_s14 }
 0x3d2   :  { %455 = vrsqrt.f32 %v225_v51 }
 0x3dc   :  { %v456_v52 = vpop.eup %455 }
 0x3dd   :  { %436 = vpush %v456_v52 }
 0x40e   :  { %s437_s15 = spop %436 }
 0x40f   :  { %v228_v53 = vstv %s437_s15 }
 0x410   :  { %v229_v54 = vmul.f32 %v228_v53, %v210_v41 }
 0x412   :  { %240 = vst [vmem:[#allocation7] sm:$0xff] %v229_v54  ;;  %v230_v55 = vmul.f32 %v229_v54, %v210_v41 }
 0x414   :  { %231 = vadd.xlane.f32.xlu1 %v230_v55 }
 0x4a1   :  { %v232_v56 = vpop.xlane.xlu1 %231 }
 0x4a2   :  { %514 = shalt.err (!%p511_p6)
}
 0x4a3   :  { %s515_s21 = scalar_lea.hbm %s636_s2, 128 }
 0x4a4   :  { %p516_p7 = scmp.ne.s32.totalorder %s636_s2, %s515_s21  ;;  %p519_p8 = scmp.lt.u32.totalorder %s515_s21, %s636_s2 }
 0x4a6   :  { %p521_p9 = pnand %p519_p8, %p516_p7 }
 0x4a8   :  { %524 = shalt.err (!%p521_p9)
}
 0x4a9   :  { %257 = dma.vmem_to_hbm [thread:$0]  %s255_s17, 128, %s636_s2, [#allocation4]   ;;  %v233_v57 = vrot.slane %v232_v56, 4  ;;  %vm246_vm1 = vcmask 0  }
 0x4aa   :  { %s564_s29 = smov 1e-20   ;;  %s565_s4 = smov [#allocation8]  }
 0x4ab   :  { %v234_v58 = vadd.f32 %v233_v57, %v232_v56  ;;  %s264_s5 = sshll.u32 %s565_s4, 4  ;;  %s265_s5 = int_to_ptr.vmem [resolvable:$true] %s264_s5 }
 0x4ac   :  { %s525_s2 = scalar_lea.vmem %s265_s5, 16  ;;  %s529_s7 = scalar_lea.vmem %s265_s5, 32 }
 0x4ad   :  { %v235_v59 = vrot.slane %v234_v58, 2  ;;  %p526_p10 = scmp.ne.s32.totalorder %s265_s5, %s525_s2  ;;  %p530_p11 = scmp.lt.s32.totalorder %s265_s5, %s265_s5 }
 0x4ae   :  { %p531_p12 = scmp.lt.s32.totalorder %s529_s7, %s525_s2 }
 0x4af   :  { %v236_v60 = vadd.f32 %v235_v59, %v234_v58 }
 0x4b0   :  { %p532_p13 = por %p531_p12, %p530_p11 }
 0x4b1   :  { %v237_v61 = vrot.slane %v236_v60, 1 }
 0x4b2   :  { %p533_p0 = pnand %p532_p13, %p526_p10 }
 0x4b3   :  { %v238_v62 = vadd.f32 %v237_v61, %v236_v60 }
 0x4b5   :  { %438 = vpush %v238_v62 }
 0x4e6   :  { %s439_s28 = spop %438 }
 0x4e7   :  { %s241_s30 = smax.f32 %s564_s29, %s439_s28 }
 0x4e8   :  { %v242_v63 = vstv %s241_s30 }
 0x4e9   :  { %457 = vrcp.f32 %v242_v63 }
 0x4f3   :  { %v458_v0 = vpop.eup %457 }
 0x4f4   :  { %440 = vpush %v458_v0 }
 0x525   :  { %s441_s6 = spop %440 }
 0x526   :  { %v245_v1 = vstv %s441_s6 }
 0x527   :  { %247 = vst.msk [vmem:[#allocation8] sm:$0x1] %vm246_vm1, %v245_v1 }
 0x528   :  { %536 = shalt.err (!%p533_p0)
}
 0x529   :  { %s537_s9 = scalar_lea.hbm %s637_s3, 16 }
 0x52a   :  { %p538_p1 = scmp.ne.s32.totalorder %s637_s3, %s537_s9  ;;  %p541_p2 = scmp.lt.u32.totalorder %s537_s9, %s637_s3 }
 0x52c   :  { %p543_p3 = pnand %p541_p2, %p538_p1 }
 0x52e   :  { %546 = shalt.err (!%p543_p3)
}
 0x52f   :  { %267 = dma.vmem_to_hbm [thread:$0]  %s265_s5, 16, %s637_s3, [#allocation9]  }
 0x530   :  { %551 = dma.done.wait [#allocation4], 128  }
 0x531   :  { %552 = vsyncadd [#allocation4], 4294967168 }
 0x532   :  { %553 = dma.done.wait [#allocation9], 16  }
 0x533   :  { %554 = vsyncadd [#allocation9], 4294967280 }
 0x534   :  { %274 = vsyncpa [#allocation3], 1 }
 0x535   :  { %275 = vsyncpa [#allocation6], 1 }
 0x536   :  { %276 = vsyncpa [#allocation4], 1 }
 0x537   :  { %277 = vsyncpa [#allocation9], 1 }

</bundles_post_ra>
